<compile_context>
chip_gen: v7x
topology: tpu7x:2x2x1
jax: 0.10.0
libtpu: 0.0.40
codegen_flags: <defaults>
</compile_context>

<pallas_src>
import functools

import numpy as np
import jax
import jax.numpy as jnp
from jax.experimental import pallas as pl
from jax.experimental.pallas import tpu as pltpu


def gaussian1d_np(window_size: int, sigma: float) -> np.ndarray:
    x = np.arange(window_size, dtype=np.float64) - window_size // 2
    g = np.exp(-(x ** 2) / float(2 * sigma ** 2))
    return (g / g.sum()).astype(np.float32)


def banded_conv_matrix_np(n: int, g: np.ndarray) -> np.ndarray:
    """(n, n) matrix B with B[k, j] = g[k - j + pad], so that X @ B is the
    zero-padded 'same' correlation of each row of X with the 1-D filter g."""
    ws = g.shape[0]
    pad = ws // 2
    m = np.zeros((n, n), dtype=np.float32)
    for j in range(n):
        for t in range(ws):
            k = j + t - pad
            if 0 <= k < n:
                m[k, j] = g[t]
    return m


def _ssim_group_kernel(x1_ref, x2_ref, valid_ref, a_v5_ref, a_wb_ref,
                       out_ref, stack_ref, *, H, C1, C2):
    """One lane-packed group of planes: 2 fused MXU matmuls for all 5 blurs,
    lane-dense elementwise SSIM map, masked partial sum to a private block."""
    x1 = x1_ref[0].astype(jnp.float32)   # (H, GW)
    x2 = x2_ref[0].astype(jnp.float32)   # (H, GW)

    # Stack the five blur inputs along sublanes in VMEM scratch: (5H, GW).
    stack_ref[0 * H:1 * H, :] = x1
    stack_ref[1 * H:2 * H, :] = x2
    stack_ref[2 * H:3 * H, :] = x1 * x1
    stack_ref[3 * H:4 * H, :] = x2 * x2
    stack_ref[4 * H:5 * H, :] = x1 * x2

    # Fused separable Gaussian blur of all 5 inputs: exactly two matmuls.
    t = jnp.dot(stack_ref[...], a_wb_ref[...],
                preferred_element_type=jnp.float32)          # row (lane) pass
    b = jnp.dot(a_v5_ref[...], t,
                preferred_element_type=jnp.float32)          # col (sublane) pass

    mu1 = b[0 * H:1 * H, :]
    mu2 = b[1 * H:2 * H, :]
    e11 = b[2 * H:3 * H, :]
    e22 = b[3 * H:4 * H, :]
    e12 = b[4 * H:5 * H, :]

    mu1_sq = mu1 * mu1
    mu2_sq = mu2 * mu2
    mu1_mu2 = mu1 * mu2
    sigma1_sq = e11 - mu1_sq
    sigma2_sq = e22 - mu2_sq
    sigma12 = e12 - mu1_mu2

    # Merged SSIM fractions; EUP approx reciprocal + one Newton step.
    num = (2.0 * mu1_mu2 + C1) * (2.0 * sigma12 + C2)
    den = (mu1_sq + mu2_sq + C1) * (sigma1_sq + sigma2_sq + C2)
    r = pl.reciprocal(den, approx=True)
    r = r * (2.0 - den * r)               # Newton refinement (rel err ~1e-7)
    lsc = num * r

    # Mask out lane-padding planes exactly, then reduce to a scalar.
    total = jnp.sum(lsc * valid_ref[0])   # (H,GW) * (1,GW) broadcast

    # Private, lane-aligned per-group partial sum (no shared accumulator).
    out_ref[...] = jnp.full(out_ref.shape, total, out_ref.dtype)


def ssim_loss_pallas(img1, img2, *, window_size=11, sigma=1.5,
                     data_range=255.0, C=(0.01, 0.03), target_lanes=128):
    """1 - mean(SSIM map), matching SSIMLoss.forward (size_average=True)."""
    N, n_ch, H, W = img1.shape
    nplanes = N * n_ch

    # How many planes to pack side-by-side along lanes.
    G = max(1, target_lanes // W)
    num_groups = -(-nplanes // G)
    total_planes = num_groups * G
    pad_planes = total_planes - nplanes
    GW = G * W

    g = gaussian1d_np(window_size, sigma)
    a_w = banded_conv_matrix_np(W, g)            # used as  X @ A_w   (row/lane)
    a_v = banded_conv_matrix_np(H, g).T          # used as  A_v @ X   (col/sublane)
    a_wb = jnp.asarray(np.kron(np.eye(G, dtype=np.float32), a_w))        # (GW, GW)
    a_v5 = jnp.asarray(np.kron(np.eye(5, dtype=np.float32), a_v))        # (5H, 5H)

    C1 = float((C[0] * data_range) ** 2)
    C2 = float((C[1] * data_range) ** 2)

    # Lane-pack the planes: (N*C, H, W) -> (num_groups, H, G*W).
    x1p = img1.astype(jnp.float32).reshape(nplanes, H, W)
    x2p = img2.astype(jnp.float32).reshape(nplanes, H, W)
    if pad_planes:
        zpad = jnp.zeros((pad_planes, H, W), jnp.float32)
        x1p = jnp.concatenate([x1p, zpad], axis=0)
        x2p = jnp.concatenate([x2p, zpad], axis=0)
    x1s = jnp.transpose(x1p.reshape(num_groups, G, H, W),
                        (0, 2, 1, 3)).reshape(num_groups, H, GW)
    x2s = jnp.transpose(x2p.reshape(num_groups, G, H, W),
                        (0, 2, 1, 3)).reshape(num_groups, H, GW)

    # Per-lane validity mask (1 for real planes, 0 for lane padding).
    valid_np = (np.arange(total_planes) < nplanes).astype(np.float32)
    valid_np = np.repeat(valid_np.reshape(num_groups, G), W, axis=1)
    valid = jnp.asarray(valid_np.reshape(num_groups, 1, GW))

    kernel = functools.partial(_ssim_group_kernel, H=H, C1=C1, C2=C2)

    partials = pl.pallas_call(
        kernel,
        out_shape=jax.ShapeDtypeStruct((num_groups, 8, 128), jnp.float32),
        grid_spec=pltpu.PrefetchScalarGridSpec(
            num_scalar_prefetch=0,
            grid=(num_groups,),
            in_specs=[
                pl.BlockSpec((1, H, GW), lambda gi: (gi, 0, 0)),
                pl.BlockSpec((1, H, GW), lambda gi: (gi, 0, 0)),
                pl.BlockSpec((1, 1, GW), lambda gi: (gi, 0, 0)),
                pl.BlockSpec((5 * H, 5 * H), lambda gi: (0, 0)),
                pl.BlockSpec((GW, GW), lambda gi: (0, 0)),
            ],
            out_specs=pl.BlockSpec((1, 8, 128), lambda gi: (gi, 0, 0)),
            scratch_shapes=[pltpu.VMEM((5 * H, GW), jnp.float32)],
        ),
        compiler_params=pltpu.CompilerParams(
            dimension_semantics=("parallel",)),
    )(x1s, x2s, valid, a_v5, a_wb)

    mean_ssim = jnp.sum(partials[:, 0, 0]) / float(nplanes * H * W)
    return 1.0 - mean_ssim


def ssim_loss_ref(img1, img2, *, window_size=11, sigma=1.5,
                  data_range=255.0, C=(0.01, 0.03)):
    """Pure-JAX reference (mirrors the PyTorch _ssim exactly; high precision)."""
    N, n_ch, H, W = img1.shape
    pad = window_size // 2
    g = gaussian1d_np(window_size, sigma)
    w2d = np.outer(g, g)
    w = jnp.asarray(np.broadcast_to(w2d, (n_ch, 1, window_size, window_size))
                    .astype(np.float32))

    def conv(x):
        return jax.lax.conv_general_dilated(
            x.astype(jnp.float32), w, window_strides=(1, 1),
            padding=[(pad, pad), (pad, pad)],
            dimension_numbers=('NCHW', 'OIHW', 'NCHW'),
            feature_group_count=n_ch,
            precision=jax.lax.Precision.HIGHEST)

    img1 = img1.astype(jnp.float32)
    img2 = img2.astype(jnp.float32)
    mu1, mu2 = conv(img1), conv(img2)
    mu1_sq, mu2_sq, mu1_mu2 = mu1 ** 2, mu2 ** 2, mu1 * mu2
    sigma1_sq = conv(img1 * img1) - mu1_sq
    sigma2_sq = conv(img2 * img2) - mu2_sq
    sigma12 = conv(img1 * img2) - mu1_mu2
    C1 = (C[0] * data_range) ** 2
    C2 = (C[1] * data_range) ** 2
    sc = (2 * sigma12 + C2) / (sigma1_sq + sigma2_sq + C2)
    lsc = (2 * mu1_mu2 + C1) / (mu1_sq + mu2_sq + C1) * sc
    return 1.0 - lsc.mean()


if __name__ == "__main__":
    key = jax.random.PRNGKey(0)
    k1, k2 = jax.random.split(key)
    N, n_ch, H, W = 2, 3, 16, 16   # channel=3 per SSIMLoss default
    img1 = jax.random.uniform(k1, (N, n_ch, H, W), jnp.float32) * 255.0
    img2 = jax.random.uniform(k2, (N, n_ch, H, W), jnp.float32) * 255.0

    loss_fn = jax.jit(ssim_loss_pallas)
    loss = jax.block_until_ready(loss_fn(img1, img2))
    ref = jax.block_until_ready(ssim_loss_ref(img1, img2))

    np.testing.assert_allclose(np.asarray(loss), np.asarray(ref),
                               rtol=1e-3, atol=1e-3)
    print("KERNEL_OK")
</pallas_src>

<mosaic_0001>
module attributes {stable_mosaic.version = 11 : i64} {
  func.func @_ssim_group_kernel(%arg0: i32, %arg1: memref<1x16x128xf32, #tpu.memory_space<vmem>>, %arg2: memref<1x16x128xf32, #tpu.memory_space<vmem>>, %arg3: memref<1x1x128xf32, #tpu.memory_space<vmem>>, %arg4: memref<80x80xf32, #tpu.memory_space<vmem>>, %arg5: memref<128x128xf32, #tpu.memory_space<vmem>>, %arg6: memref<1x8x128xf32, #tpu.memory_space<vmem>>, %arg7: memref<80x128xf32, #tpu.memory_space<vmem>>) attributes {dimension_semantics = [#tpu.dimension_semantics<parallel>], iteration_bounds = array<i64: 1>, scalar_prefetch = 0 : i64, scratch_operands = 1 : i64, tpu.core_type = #tpu.core_type<tc>, window_params = [{transform_indices = @transform_0, window_bounds = array<i64: 1, 16, 128>}, {transform_indices = @transform_1, window_bounds = array<i64: 1, 16, 128>}, {transform_indices = @transform_2, window_bounds = array<i64: 1, 1, 128>}, {pipeline_mode = #tpu.pipeline_mode<synchronous>, transform_indices = @transform_3, window_bounds = array<i64: 80, 80>}, {pipeline_mode = #tpu.pipeline_mode<synchronous>, transform_indices = @transform_4, window_bounds = array<i64: 128, 128>}, {transform_indices = @transform_5, window_bounds = array<i64: 1, 8, 128>}]} {
    %c0 = arith.constant 0 : index
    %c0_0 = arith.constant 0 : index
    %c0_1 = arith.constant 0 : index
    %0 = vector.load %arg1[%c0, %c0_0, %c0_1] : memref<1x16x128xf32, #tpu.memory_space<vmem>>, vector<1x16x128xf32>
    %1 = vector.shape_cast %0 : vector<1x16x128xf32> to vector<16x128xf32>
    %c0_2 = arith.constant 0 : index
    %c0_3 = arith.constant 0 : index
    %c0_4 = arith.constant 0 : index
    %2 = vector.load %arg2[%c0_2, %c0_3, %c0_4] : memref<1x16x128xf32, #tpu.memory_space<vmem>>, vector<1x16x128xf32>
    %3 = vector.shape_cast %2 : vector<1x16x128xf32> to vector<16x128xf32>
    %c0_5 = arith.constant 0 : index
    %c0_6 = arith.constant 0 : index
    %4 = vector.load %arg7[%c0_5, %c0_6] : memref<80x128xf32, #tpu.memory_space<vmem>>, vector<16x128xf32>
    tpu.vector_store %arg7[%c0_5, %c0_6], %1 {strides = array<i32>} : memref<80x128xf32, #tpu.memory_space<vmem>>, vector<16x128xf32>,
    %c16 = arith.constant 16 : index
    %c0_7 = arith.constant 0 : index
    %5 = vector.load %arg7[%c16, %c0_7] : memref<80x128xf32, #tpu.memory_space<vmem>>, vector<16x128xf32>
    tpu.vector_store %arg7[%c16, %c0_7], %3 {strides = array<i32>} : memref<80x128xf32, #tpu.memory_space<vmem>>, vector<16x128xf32>,
    %6 = arith.mulf %1, %1 : vector<16x128xf32>
    %c32 = arith.constant 32 : index
    %c0_8 = arith.constant 0 : index
    %7 = vector.load %arg7[%c32, %c0_8] : memref<80x128xf32, #tpu.memory_space<vmem>>, vector<16x128xf32>
    tpu.vector_store %arg7[%c32, %c0_8], %6 {strides = array<i32>} : memref<80x128xf32, #tpu.memory_space<vmem>>, vector<16x128xf32>,
    %8 = arith.mulf %3, %3 : vector<16x128xf32>
    %c48 = arith.constant 48 : index
    %c0_9 = arith.constant 0 : index
    %9 = vector.load %arg7[%c48, %c0_9] : memref<80x128xf32, #tpu.memory_space<vmem>>, vector<16x128xf32>
    tpu.vector_store %arg7[%c48, %c0_9], %8 {strides = array<i32>} : memref<80x128xf32, #tpu.memory_space<vmem>>, vector<16x128xf32>,
    %10 = arith.mulf %1, %3 : vector<16x128xf32>
    %c64 = arith.constant 64 : index
    %c0_10 = arith.constant 0 : index
    %11 = vector.load %arg7[%c64, %c0_10] : memref<80x128xf32, #tpu.memory_space<vmem>>, vector<16x128xf32>
    tpu.vector_store %arg7[%c64, %c0_10], %10 {strides = array<i32>} : memref<80x128xf32, #tpu.memory_space<vmem>>, vector<16x128xf32>,
    %c0_11 = arith.constant 0 : index
    %c0_12 = arith.constant 0 : index
    %12 = vector.load %arg7[%c0_11, %c0_12] : memref<80x128xf32, #tpu.memory_space<vmem>>, vector<80x128xf32>
    %c0_13 = arith.constant 0 : index
    %c0_14 = arith.constant 0 : index
    %13 = vector.load %arg5[%c0_13, %c0_14] : memref<128x128xf32, #tpu.memory_space<vmem>>, vector<128x128xf32>
    %cst = arith.constant dense<0.000000e+00> : vector<80x128xf32>
    %14 = tpu.matmul %12, %13, %cst {dimension_numbers = #tpu.dot_dimension_numbers<[1], [0], [0], [1], [0, 0, 1, 1], [], []>} : vector<80x128xf32>, vector<128x128xf32>, vector<80x128xf32> -> vector<80x128xf32>
    %c0_15 = arith.constant 0 : index
    %c0_16 = arith.constant 0 : index
    %15 = vector.load %arg4[%c0_15, %c0_16] : memref<80x80xf32, #tpu.memory_space<vmem>>, vector<80x80xf32>
    %cst_17 = arith.constant dense<0.000000e+00> : vector<80x128xf32>
    %16 = tpu.matmul %15, %14, %cst_17 {dimension_numbers = #tpu.dot_dimension_numbers<[1], [0], [0], [1], [0, 0, 1, 1], [], []>} : vector<80x80xf32>, vector<80x128xf32>, vector<80x128xf32> -> vector<80x128xf32>
    %17 = vector.extract_strided_slice %16 {offsets = [0, 0], sizes = [16, 128], strides = [1, 1]} : vector<80x128xf32> to vector<16x128xf32>
    %18 = vector.extract_strided_slice %16 {offsets = [16, 0], sizes = [16, 128], strides = [1, 1]} : vector<80x128xf32> to vector<16x128xf32>
    %19 = vector.extract_strided_slice %16 {offsets = [32, 0], sizes = [16, 128], strides = [1, 1]} : vector<80x128xf32> to vector<16x128xf32>
    %20 = vector.extract_strided_slice %16 {offsets = [48, 0], sizes = [16, 128], strides = [1, 1]} : vector<80x128xf32> to vector<16x128xf32>
    %21 = vector.extract_strided_slice %16 {offsets = [64, 0], sizes = [16, 128], strides = [1, 1]} : vector<80x128xf32> to vector<16x128xf32>
    %22 = arith.mulf %17, %17 : vector<16x128xf32>
    %23 = arith.mulf %18, %18 : vector<16x128xf32>
    %24 = arith.mulf %17, %18 : vector<16x128xf32>
    %25 = arith.subf %19, %22 : vector<16x128xf32>
    %26 = arith.subf %20, %23 : vector<16x128xf32>
    %27 = arith.subf %21, %24 : vector<16x128xf32>
    %cst_18 = arith.constant 2.000000e+00 : f32
    %28 = vector.broadcast %cst_18 : f32 to vector<16x128xf32>
    %29 = arith.mulf %28, %24 : vector<16x128xf32>
    %cst_19 = arith.constant 6.502500e+00 : f32
    %30 = vector.broadcast %cst_19 : f32 to vector<16x128xf32>
    %31 = arith.addf %29, %30 : vector<16x128xf32>
    %cst_20 = arith.constant 2.000000e+00 : f32
    %32 = vector.broadcast %cst_20 : f32 to vector<16x128xf32>
    %33 = arith.mulf %32, %27 : vector<16x128xf32>
    %cst_21 = arith.constant 5.852250e+01 : f32
    %34 = vector.broadcast %cst_21 : f32 to vector<16x128xf32>
    %35 = arith.addf %33, %34 : vector<16x128xf32>
    %36 = arith.mulf %31, %35 : vector<16x128xf32>
    %37 = arith.addf %22, %23 : vector<16x128xf32>
    %cst_22 = arith.constant 6.502500e+00 : f32
    %38 = vector.broadcast %cst_22 : f32 to vector<16x128xf32>
    %39 = arith.addf %37, %38 : vector<16x128xf32>
    %40 = arith.addf %25, %26 : vector<16x128xf32>
    %cst_23 = arith.constant 5.852250e+01 : f32
    %41 = vector.broadcast %cst_23 : f32 to vector<16x128xf32>
    %42 = arith.addf %40, %41 : vector<16x128xf32>
    %43 = arith.mulf %39, %42 : vector<16x128xf32>
    %44 = tpu.reciprocal %43 {approx = true} : vector<16x128xf32> -> vector<16x128xf32>
    %45 = arith.mulf %43, %44 : vector<16x128xf32>
    %cst_24 = arith.constant 2.000000e+00 : f32
    %46 = vector.broadcast %cst_24 : f32 to vector<16x128xf32>
    %47 = arith.subf %46, %45 : vector<16x128xf32>
    %48 = arith.mulf %44, %47 : vector<16x128xf32>
    %49 = arith.mulf %36, %48 : vector<16x128xf32>
    %c0_25 = arith.constant 0 : index
    %c0_26 = arith.constant 0 : index
    %c0_27 = arith.constant 0 : index
    %50 = vector.load %arg3[%c0_25, %c0_26, %c0_27] : memref<1x1x128xf32, #tpu.memory_space<vmem>>, vector<1x1x128xf32>
    %51 = vector.shape_cast %50 : vector<1x1x128xf32> to vector<1x128xf32>
    %52 = vector.broadcast %51 : vector<1x128xf32> to vector<16x128xf32>
    %53 = arith.mulf %49, %52 : vector<16x128xf32>
    %54 = vector.shape_cast %53 : vector<16x128xf32> to vector<1x16x128xf32>
    %cst_28 = arith.constant dense<0.000000e+00> : vector<1xf32>
    %55 = vector.multi_reduction <add>, %54, %cst_28 [1, 2] : vector<1x16x128xf32> to vector<1xf32>
    %56 = vector.shape_cast %55 : vector<1xf32> to vector<1x1x1xf32>
    %57 = vector.extract %56[0, 0, 0] : f32 from vector<1x1x1xf32>
    %58 = vector.broadcast %57 : f32 to vector<1x8x128xf32>
    %c0_29 = arith.constant 0 : index
    %c0_30 = arith.constant 0 : index
    %c0_31 = arith.constant 0 : index
    %59 = vector.load %arg6[%c0_29, %c0_30, %c0_31] : memref<1x8x128xf32, #tpu.memory_space<vmem>>, vector<1x8x128xf32>
    tpu.vector_store %arg6[%c0_29, %c0_30, %c0_31], %58 {strides = array<i32>} : memref<1x8x128xf32, #tpu.memory_space<vmem>>, vector<1x8x128xf32>,
    return
  }
  func.func @transform_0(%arg0: i32) -> (i32, i32, i32) {
    %c0_i32 = arith.constant 0 : i32
    %c0_i32_0 = arith.constant 0 : i32
    %c0_i32_1 = arith.constant 0 : i32
    return %arg0, %c0_i32, %c0_i32_0 : i32, i32, i32
  }
  func.func @transform_1(%arg0: i32) -> (i32, i32, i32) {
    %c0_i32 = arith.constant 0 : i32
    %c0_i32_0 = arith.constant 0 : i32
    %c0_i32_1 = arith.constant 0 : i32
    return %arg0, %c0_i32, %c0_i32_0 : i32, i32, i32
  }
  func.func @transform_2(%arg0: i32) -> (i32, i32, i32) {
    %c0_i32 = arith.constant 0 : i32
    %c0_i32_0 = arith.constant 0 : i32
    %c0_i32_1 = arith.constant 0 : i32
    return %arg0, %c0_i32, %c0_i32_0 : i32, i32, i32
  }
  func.func @transform_3(%arg0: i32) -> (i32, i32) {
    %c0_i32 = arith.constant 0 : i32
    %c0_i32_0 = arith.constant 0 : i32
    %c0_i32_1 = arith.constant 0 : i32
    return %c0_i32, %c0_i32_0 : i32, i32
  }
  func.func @transform_4(%arg0: i32) -> (i32, i32) {
    %c0_i32 = arith.constant 0 : i32
    %c0_i32_0 = arith.constant 0 : i32
    %c0_i32_1 = arith.constant 0 : i32
    return %c0_i32, %c0_i32_0 : i32, i32
  }
  func.func @transform_5(%arg0: i32) -> (i32, i32, i32) {
    %c0_i32 = arith.constant 0 : i32
    %c0_i32_0 = arith.constant 0 : i32
    %c0_i32_1 = arith.constant 0 : i32
    return %arg0, %c0_i32, %c0_i32_0 : i32, i32, i32
  }
}

</mosaic_0001>

<bundles_post_ra>
// kernel: ssim_loss_pallas.1
= control target key start
LH: loop header
LB: loop body
LE: loop exit
PB: predicated region body
PF: predicated region fallthrough
CT: control target
= control target key end

     0   :  { %vm191_vm0 = vcmask 654336   ;;  %s737_s4 = inlined_call_operand.vmem [shape: f32[128,128], index: 4, kind: input, shape index: {}]   ;;  %s738_s0 = inlined_call_operand.vmem [shape: f32[1,16,128], index: 0, kind: input, shape index: {}]   ;;  %s739_s1 = inlined_call_operand.vmem [shape: f32[1,16,128], index: 1, kind: input, shape index: {}]   ;;  %s740_s3 = inlined_call_operand.vmem [shape: f32[80,80], index: 3, kind: input, shape index: {}]   ;;  %s741_s2 = inlined_call_operand.vmem [shape: f32[1,1,128], index: 2, kind: input, shape index: {}]   ;;  %s742_s5 = inlined_call_operand.vmem [shape: f32[1,8,128], index: 5, kind: output, shape index: {}]  }
   0x1   :  { %v50_v0 = vld [vmem:[%s737_s4] sm:$0xff]  ;;  %v51_v1 = vld [vmem:[%s737_s4 + $0x8] sm:$0xff]  ;;  %v52_v2 = vld [vmem:[%s737_s4 + $0x10] sm:$0xff] }
   0x2   :  { %v543_v3 = vpack.c.bf16 %v51_v1, %v50_v0  ;;  %v53_v4 = vld [vmem:[%s737_s4 + $0x18] sm:$0xff]  ;;  %v54_v6 = vld [vmem:[%s737_s4 + $0x20] sm:$0xff]  ;;  %v55_v7 = vld [vmem:[%s737_s4 + $0x28] sm:$0xff] }
   0x3   :  { %v547_v5 = vpack.c.bf16 %v53_v4, %v52_v2  ;;  %v551_v8 = vpack.c.bf16 %v55_v7, %v54_v6  ;;  %v20_v9 = vld [vmem:[%s738_s0] sm:$0xff]  ;;  %v56_v10 = vld [vmem:[%s737_s4 + $0x30] sm:$0xff]  ;;  %v57_v11 = vld [vmem:[%s737_s4 + $0x38] sm:$0xff] }
   0x4   :  { %544 = vmatprep.subr.bf16.mxu0 %v543_v3  ;;  %493 = vmatprep.mubr.f32.mxu0 %v20_v9  ;;  %v555_v12 = vpack.c.bf16 %v57_v11, %v56_v10  ;;  %v58_v13 = vld [vmem:[%s737_s4 + $0x40] sm:$0xff]  ;;  %v59_v14 = vld [vmem:[%s737_s4 + $0x48] sm:$0xff]  ;;  %v60_v16 = vld [vmem:[%s737_s4 + $0x50] sm:$0xff]  ;;  %v28_v28 = vmul.f32 %v20_v9, %v20_v9 }
   0x5   :  { %546 = vmatpush3.bf16.msra.mxu0 %v543_v3  ;;  %v559_v15 = vpack.c.bf16 %v59_v14, %v58_v13  ;;  %v61_v17 = vld [vmem:[%s737_s4 + $0x58] sm:$0xff]  ;;  %v62_v19 = vld [vmem:[%s737_s4 + $0x60] sm:$0xff]  ;;  %v63_v20 = vld [vmem:[%s737_s4 + $0x68] sm:$0xff] }
   0x6   :  { %548 = vmatprep.subr.bf16.mxu0 %v547_v5  ;;  %v563_v18 = vpack.c.bf16 %v61_v17, %v60_v16  ;;  %v567_v21 = vpack.c.bf16 %v63_v20, %v62_v19  ;;  %v64_v22 = vld [vmem:[%s737_s4 + $0x70] sm:$0xff]  ;;  %v65_v23 = vld [vmem:[%s737_s4 + $0x78] sm:$0xff]  ;;  %v21_v25 = vld [vmem:[%s738_s0 + $0x8] sm:$0xff] }
   0x7   :  { %v571_v24 = vpack.c.bf16 %v65_v23, %v64_v22  ;;  %v22_v26 = vld [vmem:[%s739_s1] sm:$0xff]  ;;  %v23_v27 = vld [vmem:[%s739_s1 + $0x8] sm:$0xff]  ;;  %v29_v29 = vmul.f32 %v21_v25, %v21_v25  ;;  %v183_v51 = vld [vmem:[%s740_s3 + $0x10] sm:$0xff] }
   0x8   :  { %v32_v30 = vmul.f32 %v22_v26, %v22_v26  ;;  %v33_v31 = vmul.f32 %v23_v27, %v23_v27  ;;  %v36_v32 = vmul.f32 %v22_v26, %v20_v9  ;;  %v37_v33 = vmul.f32 %v23_v27, %v21_v25  ;;  %v181_v34 = vld [vmem:[%s740_s3] sm:$0xff]  ;;  %v182_v50 = vld [vmem:[%s740_s3 + $0x8] sm:$0xff]  ;;  %v184_v52 = vld [vmem:[%s740_s3 + $0x18] sm:$0xff] }
   0x9   :  { %550 = vmatpush3.bf16.msra.mxu0 %v547_v5  ;;  %528 = vmatprep.mubr.msk.f32.mxu1 %vm191_vm0, %v181_v34  ;;  %v185_v53 = vld [vmem:[%s740_s3 + $0x20] sm:$0xff]  ;;  %v186_v54 = vld [vmem:[%s740_s3 + $0x28] sm:$0xff]  ;;  %v187_v55 = vld [vmem:[%s740_s3 + $0x30] sm:$0xff] }
   0xa   :  { %552 = vmatprep.subr.bf16.mxu0 %v551_v8  ;;  %v188_v56 = vld [vmem:[%s740_s3 + $0x38] sm:$0xff]  ;;  %v189_v57 = vld [vmem:[%s740_s3 + $0x40] sm:$0xff]  ;;  %v190_v58 = vld [vmem:[%s740_s3 + $0x48] sm:$0xff] }
   0xd   :  { %554 = vmatpush3.bf16.msra.mxu0 %v551_v8 }
   0xe   :  { %556 = vmatprep.subr.bf16.mxu0 %v555_v12 }
  0x11   :  { %558 = vmatpush3.bf16.msra.mxu0 %v555_v12 }
  0x12   :  { %560 = vmatprep.subr.bf16.mxu0 %v559_v15 }
  0x15   :  { %562 = vmatpush3.bf16.msra.mxu0 %v559_v15 }
  0x16   :  { %564 = vmatprep.subr.bf16.mxu0 %v563_v18 }
  0x19   :  { %566 = vmatpush3.bf16.msra.mxu0 %v563_v18 }
  0x1a   :  { %568 = vmatprep.subr.bf16.mxu0 %v567_v21 }
  0x1d   :  { %570 = vmatpush3.bf16.msra.mxu0 %v567_v21 }
  0x1e   :  { %572 = vmatprep.subr.bf16.mxu0 %v571_v24 }
  0x21   :  { %574 = vmatpush3.bf16.msra.mxu0 %v571_v24 }
  0x24   :  { %494 = vmatmul.mubr.f32.vlgmr.msra.gmra.mrb[0].mxu0 %v21_v25 }
  0x25   :  { %496 = vmatprep.mubr.f32.mxu0 %v22_v26 }
  0x28   :  { %497 = vmatmul.mubr.f32.gmra.mrb[2].mxu0 %v23_v27 }
  0x29   :  { %499 = vmatprep.mubr.f32.mxu0 %v28_v28 }
  0x2c   :  { %500 = vmatmul.mubr.f32.gmra.mrb[4].mxu0 %v29_v29 }
  0x2d   :  { %502 = vmatprep.mubr.f32.mxu0 %v32_v30 }
  0x30   :  { %503 = vmatmul.mubr.f32.gmra.mrb[6].mxu0 %v33_v31 }
  0x31   :  { %505 = vmatprep.mubr.f32.mxu0 %v36_v32 }
  0x34   :  { %506 = vmatmul.mubr.f32.gmra.mrb[8].mxu0 %v37_v33 }
  0xf7   :  { %v495_v35 = vpop.f32.mrb[0].mxu0 }
  0xf8   :  { %v132_v36 = vpop.f32.mrb[1].mxu0 }
  0xf9   :  { %v575_v37 = vpack.c.bf16 %v495_v35, %v132_v36 }
  0xfb   :  { %v498_v38 = vpop.f32.mrb[2].mxu0  ;;  %576 = vmatprep.subr.bf16.mxu1 %v575_v37 }
  0xfc   :  { %v142_v39 = vpop.f32.mrb[3].mxu0  ;;  %578 = vmatpush3.bf16.msra.mxu1 %v575_v37 }
  0xfd   :  { %v579_v40 = vpack.c.bf16 %v498_v38, %v142_v39 }
  0xff   :  { %v501_v41 = vpop.f32.mrb[4].mxu0  ;;  %580 = vmatprep.subr.bf16.mxu1 %v579_v40 }
 0x100   :  { %v152_v42 = vpop.f32.mrb[5].mxu0  ;;  %582 = vmatpush3.bf16.msra.mxu1 %v579_v40 }
 0x101   :  { %v583_v43 = vpack.c.bf16 %v501_v41, %v152_v42 }
 0x103   :  { %v504_v44 = vpop.f32.mrb[6].mxu0  ;;  %584 = vmatprep.subr.bf16.mxu1 %v583_v43 }
 0x104   :  { %v162_v45 = vpop.f32.mrb[7].mxu0  ;;  %586 = vmatpush3.bf16.msra.mxu1 %v583_v43 }
 0x105   :  { %v587_v46 = vpack.c.bf16 %v504_v44, %v162_v45  ;;  %v414_v45 = vld [vmem:[%s741_s2] ss:$0 sm:$0xff] }
 0x107   :  { %v507_v47 = vpop.f32.mrb[8].mxu0  ;;  %588 = vmatprep.subr.bf16.mxu1 %v587_v46 }
 0x108   :  { %v172_v48 = vpop.f32.mrb[9].mxu0  ;;  %590 = vmatpush3.bf16.msra.mxu1 %v587_v46 }
 0x109   :  { %v591_v49 = vpack.c.bf16 %v507_v47, %v172_v48 }
 0x10b   :  { %592 = vmatprep.subr.bf16.mxu1 %v591_v49 }
 0x10c   :  { %594 = vmatpush3.bf16.msra.mxu1 %v591_v49 }
 0x10f   :  { %529 = vmatmul.mubr.msk.f32.vlgmr.msra.gmra.mrb[0].mxu1 %vm191_vm0, %v182_v50 }
 0x110   :  { %531 = vmatprep.mubr.msk.f32.mxu1 %vm191_vm0, %v183_v51 }
 0x113   :  { %532 = vmatmul.mubr.msk.f32.gmra.mrb[2].mxu1 %vm191_vm0, %v184_v52 }
 0x114   :  { %534 = vmatprep.mubr.msk.f32.mxu1 %vm191_vm0, %v185_v53 }
 0x117   :  { %535 = vmatmul.mubr.msk.f32.gmra.mrb[4].mxu1 %vm191_vm0, %v186_v54 }
 0x118   :  { %537 = vmatprep.mubr.msk.f32.mxu1 %vm191_vm0, %v187_v55 }
 0x11b   :  { %538 = vmatmul.mubr.msk.f32.gmra.mrb[6].mxu1 %vm191_vm0, %v188_v56 }
 0x11c   :  { %540 = vmatprep.mubr.msk.f32.mxu1 %vm191_vm0, %v189_v57 }
 0x11f   :  { %541 = vmatmul.mubr.msk.f32.gmra.mrb[8].mxu1 %vm191_vm0, %v190_v58 }
 0x1e2   :  { %v530_v59 = vpop.f32.mrb[0].mxu1 }
 0x1e3   :  { %v288_v60 = vpop.f32.mrb[1].mxu1  ;;  %v338_v62 = vmul.f32 %v530_v59, %v530_v59 }
 0x1e4   :  { %v337_v2 = vmul.f32 %v288_v60, %v288_v60 }
 0x1e6   :  { %v533_v61 = vpop.f32.mrb[2].mxu1 }
 0x1e7   :  { %v340_v63 = vmul.f32 %v533_v61, %v533_v61  ;;  %v342_v0 = vmul.f32 %v533_v61, %v530_v59  ;;  %v298_v1 = vpop.f32.mrb[3].mxu1 }
 0x1e8   :  { %v339_v3 = vmul.f32 %v298_v1, %v298_v1  ;;  %v341_v4 = vmul.f32 %v298_v1, %v288_v60 }
 0x1e9   :  { %v360_v5 = vadd.f32 %v340_v63, %v338_v62  ;;  %v350_v18 = vmul.f32 2.0, %v342_v0 }
 0x1ea   :  { %v359_v6 = vadd.f32 %v339_v3, %v337_v2  ;;  %v536_v7 = vpop.f32.mrb[4].mxu1  ;;  %v349_v23 = vmul.f32 2.0, %v341_v4 }
 0x1eb   :  { %v344_v8 = vsub.f32 %v536_v7, %v338_v62  ;;  %v308_v9 = vpop.f32.mrb[5].mxu1  ;;  %v362_v19 = vadd.f32 6.5025, %v360_v5  ;;  %v352_v31 = vadd.f32 6.5025, %v350_v18 }
 0x1ec   :  { %v343_v10 = vsub.f32 %v308_v9, %v337_v2  ;;  %v361_v24 = vadd.f32 6.5025, %v359_v6  ;;  %v351_v33 = vadd.f32 6.5025, %v349_v23 }
 0x1ee   :  { %v539_v11 = vpop.f32.mrb[6].mxu1 }
 0x1ef   :  { %v346_v12 = vsub.f32 %v539_v11, %v340_v63  ;;  %v318_v13 = vpop.f32.mrb[7].mxu1 }
 0x1f0   :  { %v345_v14 = vsub.f32 %v318_v13, %v339_v3 }
 0x1f1   :  { %v364_v15 = vadd.f32 %v346_v12, %v344_v8 }
 0x1f2   :  { %v363_v16 = vadd.f32 %v345_v14, %v343_v10  ;;  %v542_v17 = vpop.f32.mrb[8].mxu1 }
 0x1f3   :  { %v366_v20 = vadd.f32 58.5225, %v364_v15  ;;  %v348_v21 = vsub.f32 %v542_v17, %v342_v0  ;;  %v328_v22 = vpop.f32.mrb[9].mxu1 }
 0x1f4   :  { %v365_v25 = vadd.f32 58.5225, %v363_v16  ;;  %v347_v26 = vsub.f32 %v328_v22, %v341_v4 }
 0x1f5   :  { %v368_v27 = vmul.f32 %v366_v20, %v362_v19  ;;  %v354_v28 = vmul.f32 2.0, %v348_v21 }
 0x1f6   :  { %v367_v29 = vmul.f32 %v365_v25, %v361_v24  ;;  %v353_v30 = vmul.f32 2.0, %v347_v26 }
 0x1f7   :  { %597 = vrcp.f32 %v368_v27  ;;  %v356_v32 = vadd.f32 58.5225, %v354_v28 }
 0x1f8   :  { %599 = vrcp.f32 %v367_v29  ;;  %v355_v34 = vadd.f32 58.5225, %v353_v30 }
 0x1f9   :  { %v358_v35 = vmul.f32 %v356_v32, %v352_v31 }
 0x1fa   :  { %v357_v36 = vmul.f32 %v355_v34, %v351_v33 }
 0x201   :  { %v598_v37 = vpop.eup %597 }
 0x202   :  { %v600_v38 = vpop.eup %599  ;;  %v372_v39 = vmul.f32 %v598_v37, %v368_v27 }
 0x203   :  { %v371_v40 = vmul.f32 %v600_v38, %v367_v29 }
 0x204   :  { %v374_v41 = vsub.f32 2.0, %v372_v39 }
 0x205   :  { %v373_v42 = vsub.f32 2.0, %v371_v40 }
 0x206   :  { %v376_v43 = vmul.f32 %v598_v37, %v374_v41 }
 0x207   :  { %v375_v44 = vmul.f32 %v600_v38, %v373_v42 }
 0x208   :  { %v378_v46 = vmul.f32 %v376_v43, %v358_v35 }
 0x209   :  { %v377_v47 = vmul.f32 %v375_v44, %v357_v36 }
 0x20a   :  { %v387_v48 = vmul.f32 %v414_v45, %v378_v46 }
 0x20b   :  { %v386_v49 = vmul.f32 %v414_v45, %v377_v47 }
 0x20d   :  { %v388_v50 = vadd.f32 %v387_v48, %v386_v49 }
 0x20f   :  { %389 = vadd.xlane.f32.xlu0 %v388_v50 }
 0x29c   :  { %v390_v51 = vpop.xlane.xlu0 %389 }
 0x29d   :  { %v391_v52 = vrot.slane %v390_v51, 4 }
 0x29f   :  { %v392_v53 = vadd.f32 %v391_v52, %v390_v51 }
 0x2a1   :  { %v393_v54 = vrot.slane %v392_v53, 2 }
 0x2a3   :  { %v394_v55 = vadd.f32 %v393_v54, %v392_v53 }
 0x2a5   :  { %v395_v56 = vrot.slane %v394_v55, 1 }
 0x2a7   :  { %v396_v57 = vadd.f32 %v395_v56, %v394_v55 }
 0x2a9   :  { %595 = vpush %v396_v57 }
 0x2da   :  { %s596_s26 = spop %595 }
 0x2db   :  { %v398_v58 = vstv %s596_s26 }
 0x2dc   :  { %399 = vst [vmem:[%s742_s5] sm:$0xff] %v398_v58 }

</bundles_post_ra>
